<compile_context>
chip_gen: v6e
topology: v6e:2x2x1
jax: 0.10.0
libtpu: 0.0.40
codegen_flags: <defaults>
</compile_context>

<pallas_src>
import numpy as np
import jax
import jax.numpy as jnp
from jax.experimental import pallas as pl
from jax.experimental.pallas import tpu as pltpu


# ----------------------------------------------------------------------------
# Fixed filter constants (mirrors the PyTorch __init__ exactly).
# ----------------------------------------------------------------------------
def _build_filters(kernel_size: int):
    k = kernel_size
    horizontal = np.array(
        [[-1.0 if j == 0 else 1.0 if j == k - 1 else 0.0 for j in range(k)]
         for _ in range(k)], dtype=np.float32)
    vertical = np.array(
        [[-1.0 if i == 0 else 1.0 if i == k - 1 else 0.0 for _ in range(k)]
         for i in range(k)], dtype=np.float32)
    both = horizontal + vertical
    if k == 1:
        horizontal = np.ones((1, 1), np.float32)
        vertical = np.ones((1, 1), np.float32)
        both = np.ones((1, 1), np.float32)
    return horizontal, vertical, both


# ----------------------------------------------------------------------------
# Pallas kernel: conv as VPU shifted adds/subtracts with constant weights.
# ----------------------------------------------------------------------------
def _make_conv_kernel(H, W, k, bias_value, horizontal, vertical, both):
    pad = k // 2
    Hp, Wp = H + 2 * pad, W + 2 * pad
    Cin = 3
    bias = float(bias_value)
    # In the module, both = horizontal + vertical except for kernel_size == 1.
    both_is_sum = bool(np.array_equal(both, horizontal + vertical))

    def tap_accumulate(xp_ref, c, filt):
        """Correlate padded channel c with the constant filter `filt` (VPU only)."""
        acc = None
        for kh in range(k):
            for kw in range(k):
                wt = float(filt[kh, kw])
                if wt == 0.0:
                    continue  # skip zero taps entirely
                tap = xp_ref[c, kh:kh + H, kw:kw + W]
                if wt == 1.0:
                    term = tap
                elif wt == -1.0:
                    term = -tap
                else:
                    term = tap * wt
                acc = term if acc is None else acc + term
        if acc is None:
            acc = jnp.zeros((H, W), jnp.float32)
        return acc

    def kernel(x_ref, o_ref, xp_ref):
        # x_ref : (1, Cin, H, W)   one image, NCHW (no wrapper transpose / pad)
        # o_ref : (1, 6, H, W)
        # xp_ref: (Cin, Hp, Wp)    zero-padded "same" halo built in VMEM
        xp_ref[...] = jnp.zeros((Cin, Hp, Wp), jnp.float32)
        xp_ref[:, pad:pad + H, pad:pad + W] = x_ref[0].astype(jnp.float32)

        def with_bias(p):
            return (p + bias) if bias != 0.0 else p

        out_h = None  # sum_c conv(x_c, horizontal) -> out channel 0
        out_v = None  # sum_c conv(x_c, vertical)   -> out channel 1
        out_b = None  # sum_c conv(x_c, both)       -> out channel 2
        for c in range(Cin):
            h_c = tap_accumulate(xp_ref, c, horizontal)
            v_c = tap_accumulate(xp_ref, c, vertical)
            b_c = (h_c + v_c) if both_is_sum else tap_accumulate(xp_ref, c, both)
            out_h = h_c if out_h is None else out_h + h_c
            out_v = v_c if out_v is None else out_v + v_c
            out_b = b_c if out_b is None else out_b + b_c
            # out channel 3 + c: per-input-channel "both" response
            o_ref[0, 3 + c] = with_bias(b_c).astype(o_ref.dtype)

        o_ref[0, 0] = with_bias(out_h).astype(o_ref.dtype)
        o_ref[0, 1] = with_bias(out_v).astype(o_ref.dtype)
        o_ref[0, 2] = with_bias(out_b).astype(o_ref.dtype)

    return kernel


def cnn_forward(x_nchw: jax.Array, kernel_size: int = 3, bias_value: float = 0.0):
    """Forward pass of the CNN module. x_nchw: (N, 3, H, W) float32 -> (N, 6, H, W)."""
    N, Cin, H, W = x_nchw.shape
    assert Cin == 3, "module is fixed to 3 input channels"
    Cout = 6
    k = kernel_size
    pad = k // 2

    horizontal, vertical, both = _build_filters(k)
    kernel = _make_conv_kernel(H, W, k, bias_value, horizontal, vertical, both)

    x = x_nchw.astype(jnp.float32)

    return pl.pallas_call(
        kernel,
        out_shape=jax.ShapeDtypeStruct((N, Cout, H, W), jnp.float32),
        grid_spec=pltpu.PrefetchScalarGridSpec(
            num_scalar_prefetch=0,
            grid=(N,),
            in_specs=[pl.BlockSpec((1, Cin, H, W), lambda n: (n, 0, 0, 0))],
            out_specs=pl.BlockSpec((1, Cout, H, W), lambda n: (n, 0, 0, 0)),
            scratch_shapes=[pltpu.VMEM((Cin, H + 2 * pad, W + 2 * pad), jnp.float32)],
        ),
        compiler_params=pltpu.CompilerParams(
            dimension_semantics=("parallel",),
        ),
    )(x)


# ----------------------------------------------------------------------------
# Pure-JAX reference (for correctness check only).
# ----------------------------------------------------------------------------
def cnn_forward_ref(x_nchw, kernel_size=3, bias_value=0.0):
    horizontal, vertical, both = _build_filters(kernel_size)
    k = kernel_size
    w = np.zeros((6, 3, k, k), dtype=np.float32)  # (Cout, Cin, KH, KW)
    w[0, :, :, :] = horizontal
    w[1, :, :, :] = vertical
    w[2, :, :, :] = both
    w[3, 0, :, :] = both
    w[4, 1, :, :] = both
    w[5, 2, :, :] = both
    pad = k // 2
    out = jax.lax.conv_general_dilated(
        x_nchw.astype(jnp.float32),
        jnp.asarray(w),
        window_strides=(1, 1),
        padding=[(pad, pad), (pad, pad)],
        dimension_numbers=("NCHW", "OIHW", "NCHW"),
    )
    return out + jnp.float32(bias_value)


if __name__ == "__main__":
    key = jax.random.PRNGKey(0)
    # Small deterministic input consistent with the module: N=2, Cin=3, H=W=16.
    x = jax.random.normal(key, (2, 3, 16, 16), dtype=jnp.float32)

    out = cnn_forward(x)
    out = jax.block_until_ready(out)

    ref = cnn_forward_ref(x)
    assert out.shape == (2, 6, 16, 16), out.shape
    np.testing.assert_allclose(np.asarray(out), np.asarray(ref), rtol=1e-5, atol=1e-5)

    print("KERNEL_OK")
</pallas_src>

<mosaic_0001>
module attributes {stable_mosaic.version = 11 : i64} {
  func.func @kernel(%arg0: i32, %arg1: memref<1x3x16x16xf32, #tpu.memory_space<vmem>>, %arg2: memref<1x6x16x16xf32, #tpu.memory_space<vmem>>, %arg3: memref<3x18x18xf32, #tpu.memory_space<vmem>>) attributes {dimension_semantics = [#tpu.dimension_semantics<parallel>], iteration_bounds = array<i64: 2>, scalar_prefetch = 0 : i64, scratch_operands = 1 : i64, tpu.core_type = #tpu.core_type<tc>, window_params = [{transform_indices = @transform_0, window_bounds = array<i64: 1, 3, 16, 16>}, {transform_indices = @transform_1, window_bounds = array<i64: 1, 6, 16, 16>}]} {
    %cst = arith.constant 0.000000e+00 : f32
    %0 = vector.broadcast %cst : f32 to vector<3x18x18xf32>
    %c0 = arith.constant 0 : index
    %c0_0 = arith.constant 0 : index
    %c0_1 = arith.constant 0 : index
    %1 = vector.load %arg3[%c0, %c0_0, %c0_1] : memref<3x18x18xf32, #tpu.memory_space<vmem>>, vector<3x18x18xf32>
    tpu.vector_store %arg3[%c0, %c0_0, %c0_1], %0 {strides = array<i32>} : memref<3x18x18xf32, #tpu.memory_space<vmem>>, vector<3x18x18xf32>,
    %c0_2 = arith.constant 0 : index
    %c0_3 = arith.constant 0 : index
    %c0_4 = arith.constant 0 : index
    %c0_5 = arith.constant 0 : index
    %2 = vector.load %arg1[%c0_2, %c0_3, %c0_4, %c0_5] : memref<1x3x16x16xf32, #tpu.memory_space<vmem>>, vector<1x3x16x16xf32>
    %3 = vector.shape_cast %2 : vector<1x3x16x16xf32> to vector<3x16x16xf32>
    %c0_6 = arith.constant 0 : index
    %c1 = arith.constant 1 : index
    %c1_7 = arith.constant 1 : index
    %4 = vector.load %arg3[%c0_6, %c1, %c1_7] : memref<3x18x18xf32, #tpu.memory_space<vmem>>, vector<3x16x16xf32>
    tpu.vector_store %arg3[%c0_6, %c1, %c1_7], %3 {strides = array<i32>} : memref<3x18x18xf32, #tpu.memory_space<vmem>>, vector<3x16x16xf32>,
    %c0_8 = arith.constant 0 : index
    %c0_9 = arith.constant 0 : index
    %c0_10 = arith.constant 0 : index
    %5 = vector.load %arg3[%c0_8, %c0_9, %c0_10] : memref<3x18x18xf32, #tpu.memory_space<vmem>>, vector<1x16x16xf32>
    %6 = vector.shape_cast %5 : vector<1x16x16xf32> to vector<16x16xf32>
    %cst_11 = arith.constant 0.000000e+00 : f32
    %7 = vector.broadcast %cst_11 : f32 to vector<16x16xf32>
    %8 = arith.subf %7, %6 : vector<16x16xf32>
    %c0_12 = arith.constant 0 : index
    %c0_13 = arith.constant 0 : index
    %c2 = arith.constant 2 : index
    %9 = vector.load %arg3[%c0_12, %c0_13, %c2] : memref<3x18x18xf32, #tpu.memory_space<vmem>>, vector<1x16x16xf32>
    %10 = vector.shape_cast %9 : vector<1x16x16xf32> to vector<16x16xf32>
    %11 = arith.addf %8, %10 : vector<16x16xf32>
    %c0_14 = arith.constant 0 : index
    %c1_15 = arith.constant 1 : index
    %c0_16 = arith.constant 0 : index
    %12 = vector.load %arg3[%c0_14, %c1_15, %c0_16] : memref<3x18x18xf32, #tpu.memory_space<vmem>>, vector<1x16x16xf32>
    %13 = vector.shape_cast %12 : vector<1x16x16xf32> to vector<16x16xf32>
    %cst_17 = arith.constant 0.000000e+00 : f32
    %14 = vector.broadcast %cst_17 : f32 to vector<16x16xf32>
    %15 = arith.subf %14, %13 : vector<16x16xf32>
    %16 = arith.addf %11, %15 : vector<16x16xf32>
    %c0_18 = arith.constant 0 : index
    %c1_19 = arith.constant 1 : index
    %c2_20 = arith.constant 2 : index
    %17 = vector.load %arg3[%c0_18, %c1_19, %c2_20] : memref<3x18x18xf32, #tpu.memory_space<vmem>>, vector<1x16x16xf32>
    %18 = vector.shape_cast %17 : vector<1x16x16xf32> to vector<16x16xf32>
    %19 = arith.addf %16, %18 : vector<16x16xf32>
    %c0_21 = arith.constant 0 : index
    %c2_22 = arith.constant 2 : index
    %c0_23 = arith.constant 0 : index
    %20 = vector.load %arg3[%c0_21, %c2_22, %c0_23] : memref<3x18x18xf32, #tpu.memory_space<vmem>>, vector<1x16x16xf32>
    %21 = vector.shape_cast %20 : vector<1x16x16xf32> to vector<16x16xf32>
    %cst_24 = arith.constant 0.000000e+00 : f32
    %22 = vector.broadcast %cst_24 : f32 to vector<16x16xf32>
    %23 = arith.subf %22, %21 : vector<16x16xf32>
    %24 = arith.addf %19, %23 : vector<16x16xf32>
    %c0_25 = arith.constant 0 : index
    %c2_26 = arith.constant 2 : index
    %c2_27 = arith.constant 2 : index
    %25 = vector.load %arg3[%c0_25, %c2_26, %c2_27] : memref<3x18x18xf32, #tpu.memory_space<vmem>>, vector<1x16x16xf32>
    %26 = vector.shape_cast %25 : vector<1x16x16xf32> to vector<16x16xf32>
    %27 = arith.addf %24, %26 : vector<16x16xf32>
    %c0_28 = arith.constant 0 : index
    %c0_29 = arith.constant 0 : index
    %c0_30 = arith.constant 0 : index
    %28 = vector.load %arg3[%c0_28, %c0_29, %c0_30] : memref<3x18x18xf32, #tpu.memory_space<vmem>>, vector<1x16x16xf32>
    %29 = vector.shape_cast %28 : vector<1x16x16xf32> to vector<16x16xf32>
    %cst_31 = arith.constant 0.000000e+00 : f32
    %30 = vector.broadcast %cst_31 : f32 to vector<16x16xf32>
    %31 = arith.subf %30, %29 : vector<16x16xf32>
    %c0_32 = arith.constant 0 : index
    %c0_33 = arith.constant 0 : index
    %c1_34 = arith.constant 1 : index
    %32 = vector.load %arg3[%c0_32, %c0_33, %c1_34] : memref<3x18x18xf32, #tpu.memory_space<vmem>>, vector<1x16x16xf32>
    %33 = vector.shape_cast %32 : vector<1x16x16xf32> to vector<16x16xf32>
    %cst_35 = arith.constant 0.000000e+00 : f32
    %34 = vector.broadcast %cst_35 : f32 to vector<16x16xf32>
    %35 = arith.subf %34, %33 : vector<16x16xf32>
    %36 = arith.addf %31, %35 : vector<16x16xf32>
    %c0_36 = arith.constant 0 : index
    %c0_37 = arith.constant 0 : index
    %c2_38 = arith.constant 2 : index
    %37 = vector.load %arg3[%c0_36, %c0_37, %c2_38] : memref<3x18x18xf32, #tpu.memory_space<vmem>>, vector<1x16x16xf32>
    %38 = vector.shape_cast %37 : vector<1x16x16xf32> to vector<16x16xf32>
    %cst_39 = arith.constant 0.000000e+00 : f32
    %39 = vector.broadcast %cst_39 : f32 to vector<16x16xf32>
    %40 = arith.subf %39, %38 : vector<16x16xf32>
    %41 = arith.addf %36, %40 : vector<16x16xf32>
    %c0_40 = arith.constant 0 : index
    %c2_41 = arith.constant 2 : index
    %c0_42 = arith.constant 0 : index
    %42 = vector.load %arg3[%c0_40, %c2_41, %c0_42] : memref<3x18x18xf32, #tpu.memory_space<vmem>>, vector<1x16x16xf32>
    %43 = vector.shape_cast %42 : vector<1x16x16xf32> to vector<16x16xf32>
    %44 = arith.addf %41, %43 : vector<16x16xf32>
    %c0_43 = arith.constant 0 : index
    %c2_44 = arith.constant 2 : index
    %c1_45 = arith.constant 1 : index
    %45 = vector.load %arg3[%c0_43, %c2_44, %c1_45] : memref<3x18x18xf32, #tpu.memory_space<vmem>>, vector<1x16x16xf32>
    %46 = vector.shape_cast %45 : vector<1x16x16xf32> to vector<16x16xf32>
    %47 = arith.addf %44, %46 : vector<16x16xf32>
    %c0_46 = arith.constant 0 : index
    %c2_47 = arith.constant 2 : index
    %c2_48 = arith.constant 2 : index
    %48 = vector.load %arg3[%c0_46, %c2_47, %c2_48] : memref<3x18x18xf32, #tpu.memory_space<vmem>>, vector<1x16x16xf32>
    %49 = vector.shape_cast %48 : vector<1x16x16xf32> to vector<16x16xf32>
    %50 = arith.addf %47, %49 : vector<16x16xf32>
    %51 = arith.addf %27, %50 : vector<16x16xf32>
    %c0_49 = arith.constant 0 : index
    %c3 = arith.constant 3 : index
    %c0_50 = arith.constant 0 : index
    %c0_51 = arith.constant 0 : index
    %52 = vector.load %arg2[%c0_49, %c3, %c0_50, %c0_51] : memref<1x6x16x16xf32, #tpu.memory_space<vmem>>, vector<1x1x16x16xf32>
    %53 = vector.shape_cast %52 : vector<1x1x16x16xf32> to vector<16x16xf32>
    %54 = vector.shape_cast %51 : vector<16x16xf32> to vector<1x1x16x16xf32>
    tpu.vector_store %arg2[%c0_49, %c3, %c0_50, %c0_51], %54 {strides = array<i32>} : memref<1x6x16x16xf32, #tpu.memory_space<vmem>>, vector<1x1x16x16xf32>,
    %c1_52 = arith.constant 1 : index
    %c0_53 = arith.constant 0 : index
    %c0_54 = arith.constant 0 : index
    %55 = vector.load %arg3[%c1_52, %c0_53, %c0_54] : memref<3x18x18xf32, #tpu.memory_space<vmem>>, vector<1x16x16xf32>
    %56 = vector.shape_cast %55 : vector<1x16x16xf32> to vector<16x16xf32>
    %cst_55 = arith.constant 0.000000e+00 : f32
    %57 = vector.broadcast %cst_55 : f32 to vector<16x16xf32>
    %58 = arith.subf %57, %56 : vector<16x16xf32>
    %c1_56 = arith.constant 1 : index
    %c0_57 = arith.constant 0 : index
    %c2_58 = arith.constant 2 : index
    %59 = vector.load %arg3[%c1_56, %c0_57, %c2_58] : memref<3x18x18xf32, #tpu.memory_space<vmem>>, vector<1x16x16xf32>
    %60 = vector.shape_cast %59 : vector<1x16x16xf32> to vector<16x16xf32>
    %61 = arith.addf %58, %60 : vector<16x16xf32>
    %c1_59 = arith.constant 1 : index
    %c1_60 = arith.constant 1 : index
    %c0_61 = arith.constant 0 : index
    %62 = vector.load %arg3[%c1_59, %c1_60, %c0_61] : memref<3x18x18xf32, #tpu.memory_space<vmem>>, vector<1x16x16xf32>
    %63 = vector.shape_cast %62 : vector<1x16x16xf32> to vector<16x16xf32>
    %cst_62 = arith.constant 0.000000e+00 : f32
    %64 = vector.broadcast %cst_62 : f32 to vector<16x16xf32>
    %65 = arith.subf %64, %63 : vector<16x16xf32>
    %66 = arith.addf %61, %65 : vector<16x16xf32>
    %c1_63 = arith.constant 1 : index
    %c1_64 = arith.constant 1 : index
    %c2_65 = arith.constant 2 : index
    %67 = vector.load %arg3[%c1_63, %c1_64, %c2_65] : memref<3x18x18xf32, #tpu.memory_space<vmem>>, vector<1x16x16xf32>
    %68 = vector.shape_cast %67 : vector<1x16x16xf32> to vector<16x16xf32>
    %69 = arith.addf %66, %68 : vector<16x16xf32>
    %c1_66 = arith.constant 1 : index
    %c2_67 = arith.constant 2 : index
    %c0_68 = arith.constant 0 : index
    %70 = vector.load %arg3[%c1_66, %c2_67, %c0_68] : memref<3x18x18xf32, #tpu.memory_space<vmem>>, vector<1x16x16xf32>
    %71 = vector.shape_cast %70 : vector<1x16x16xf32> to vector<16x16xf32>
    %cst_69 = arith.constant 0.000000e+00 : f32
    %72 = vector.broadcast %cst_69 : f32 to vector<16x16xf32>
    %73 = arith.subf %72, %71 : vector<16x16xf32>
    %74 = arith.addf %69, %73 : vector<16x16xf32>
    %c1_70 = arith.constant 1 : index
    %c2_71 = arith.constant 2 : index
    %c2_72 = arith.constant 2 : index
    %75 = vector.load %arg3[%c1_70, %c2_71, %c2_72] : memref<3x18x18xf32, #tpu.memory_space<vmem>>, vector<1x16x16xf32>
    %76 = vector.shape_cast %75 : vector<1x16x16xf32> to vector<16x16xf32>
    %77 = arith.addf %74, %76 : vector<16x16xf32>
    %c1_73 = arith.constant 1 : index
    %c0_74 = arith.constant 0 : index
    %c0_75 = arith.constant 0 : index
    %78 = vector.load %arg3[%c1_73, %c0_74, %c0_75] : memref<3x18x18xf32, #tpu.memory_space<vmem>>, vector<1x16x16xf32>
    %79 = vector.shape_cast %78 : vector<1x16x16xf32> to vector<16x16xf32>
    %cst_76 = arith.constant 0.000000e+00 : f32
    %80 = vector.broadcast %cst_76 : f32 to vector<16x16xf32>
    %81 = arith.subf %80, %79 : vector<16x16xf32>
    %c1_77 = arith.constant 1 : index
    %c0_78 = arith.constant 0 : index
    %c1_79 = arith.constant 1 : index
    %82 = vector.load %arg3[%c1_77, %c0_78, %c1_79] : memref<3x18x18xf32, #tpu.memory_space<vmem>>, vector<1x16x16xf32>
    %83 = vector.shape_cast %82 : vector<1x16x16xf32> to vector<16x16xf32>
    %cst_80 = arith.constant 0.000000e+00 : f32
    %84 = vector.broadcast %cst_80 : f32 to vector<16x16xf32>
    %85 = arith.subf %84, %83 : vector<16x16xf32>
    %86 = arith.addf %81, %85 : vector<16x16xf32>
    %c1_81 = arith.constant 1 : index
    %c0_82 = arith.constant 0 : index
    %c2_83 = arith.constant 2 : index
    %87 = vector.load %arg3[%c1_81, %c0_82, %c2_83] : memref<3x18x18xf32, #tpu.memory_space<vmem>>, vector<1x16x16xf32>
    %88 = vector.shape_cast %87 : vector<1x16x16xf32> to vector<16x16xf32>
    %cst_84 = arith.constant 0.000000e+00 : f32
    %89 = vector.broadcast %cst_84 : f32 to vector<16x16xf32>
    %90 = arith.subf %89, %88 : vector<16x16xf32>
    %91 = arith.addf %86, %90 : vector<16x16xf32>
    %c1_85 = arith.constant 1 : index
    %c2_86 = arith.constant 2 : index
    %c0_87 = arith.constant 0 : index
    %92 = vector.load %arg3[%c1_85, %c2_86, %c0_87] : memref<3x18x18xf32, #tpu.memory_space<vmem>>, vector<1x16x16xf32>
    %93 = vector.shape_cast %92 : vector<1x16x16xf32> to vector<16x16xf32>
    %94 = arith.addf %91, %93 : vector<16x16xf32>
    %c1_88 = arith.constant 1 : index
    %c2_89 = arith.constant 2 : index
    %c1_90 = arith.constant 1 : index
    %95 = vector.load %arg3[%c1_88, %c2_89, %c1_90] : memref<3x18x18xf32, #tpu.memory_space<vmem>>, vector<1x16x16xf32>
    %96 = vector.shape_cast %95 : vector<1x16x16xf32> to vector<16x16xf32>
    %97 = arith.addf %94, %96 : vector<16x16xf32>
    %c1_91 = arith.constant 1 : index
    %c2_92 = arith.constant 2 : index
    %c2_93 = arith.constant 2 : index
    %98 = vector.load %arg3[%c1_91, %c2_92, %c2_93] : memref<3x18x18xf32, #tpu.memory_space<vmem>>, vector<1x16x16xf32>
    %99 = vector.shape_cast %98 : vector<1x16x16xf32> to vector<16x16xf32>
    %100 = arith.addf %97, %99 : vector<16x16xf32>
    %101 = arith.addf %77, %100 : vector<16x16xf32>
    %102 = arith.addf %27, %77 : vector<16x16xf32>
    %103 = arith.addf %50, %100 : vector<16x16xf32>
    %104 = arith.addf %51, %101 : vector<16x16xf32>
    %c0_94 = arith.constant 0 : index
    %c4 = arith.constant 4 : index
    %c0_95 = arith.constant 0 : index
    %c0_96 = arith.constant 0 : index
    %105 = vector.load %arg2[%c0_94, %c4, %c0_95, %c0_96] : memref<1x6x16x16xf32, #tpu.memory_space<vmem>>, vector<1x1x16x16xf32>
    %106 = vector.shape_cast %105 : vector<1x1x16x16xf32> to vector<16x16xf32>
    %107 = vector.shape_cast %101 : vector<16x16xf32> to vector<1x1x16x16xf32>
    tpu.vector_store %arg2[%c0_94, %c4, %c0_95, %c0_96], %107 {strides = array<i32>} : memref<1x6x16x16xf32, #tpu.memory_space<vmem>>, vector<1x1x16x16xf32>,
    %c2_97 = arith.constant 2 : index
    %c0_98 = arith.constant 0 : index
    %c0_99 = arith.constant 0 : index
    %108 = vector.load %arg3[%c2_97, %c0_98, %c0_99] : memref<3x18x18xf32, #tpu.memory_space<vmem>>, vector<1x16x16xf32>
    %109 = vector.shape_cast %108 : vector<1x16x16xf32> to vector<16x16xf32>
    %cst_100 = arith.constant 0.000000e+00 : f32
    %110 = vector.broadcast %cst_100 : f32 to vector<16x16xf32>
    %111 = arith.subf %110, %109 : vector<16x16xf32>
    %c2_101 = arith.constant 2 : index
    %c0_102 = arith.constant 0 : index
    %c2_103 = arith.constant 2 : index
    %112 = vector.load %arg3[%c2_101, %c0_102, %c2_103] : memref<3x18x18xf32, #tpu.memory_space<vmem>>, vector<1x16x16xf32>
    %113 = vector.shape_cast %112 : vector<1x16x16xf32> to vector<16x16xf32>
    %114 = arith.addf %111, %113 : vector<16x16xf32>
    %c2_104 = arith.constant 2 : index
    %c1_105 = arith.constant 1 : index
    %c0_106 = arith.constant 0 : index
    %115 = vector.load %arg3[%c2_104, %c1_105, %c0_106] : memref<3x18x18xf32, #tpu.memory_space<vmem>>, vector<1x16x16xf32>
    %116 = vector.shape_cast %115 : vector<1x16x16xf32> to vector<16x16xf32>
    %cst_107 = arith.constant 0.000000e+00 : f32
    %117 = vector.broadcast %cst_107 : f32 to vector<16x16xf32>
    %118 = arith.subf %117, %116 : vector<16x16xf32>
    %119 = arith.addf %114, %118 : vector<16x16xf32>
    %c2_108 = arith.constant 2 : index
    %c1_109 = arith.constant 1 : index
    %c2_110 = arith.constant 2 : index
    %120 = vector.load %arg3[%c2_108, %c1_109, %c2_110] : memref<3x18x18xf32, #tpu.memory_space<vmem>>, vector<1x16x16xf32>
    %121 = vector.shape_cast %120 : vector<1x16x16xf32> to vector<16x16xf32>
    %122 = arith.addf %119, %121 : vector<16x16xf32>
    %c2_111 = arith.constant 2 : index
    %c2_112 = arith.constant 2 : index
    %c0_113 = arith.constant 0 : index
    %123 = vector.load %arg3[%c2_111, %c2_112, %c0_113] : memref<3x18x18xf32, #tpu.memory_space<vmem>>, vector<1x16x16xf32>
    %124 = vector.shape_cast %123 : vector<1x16x16xf32> to vector<16x16xf32>
    %cst_114 = arith.constant 0.000000e+00 : f32
    %125 = vector.broadcast %cst_114 : f32 to vector<16x16xf32>
    %126 = arith.subf %125, %124 : vector<16x16xf32>
    %127 = arith.addf %122, %126 : vector<16x16xf32>
    %c2_115 = arith.constant 2 : index
    %c2_116 = arith.constant 2 : index
    %c2_117 = arith.constant 2 : index
    %128 = vector.load %arg3[%c2_115, %c2_116, %c2_117] : memref<3x18x18xf32, #tpu.memory_space<vmem>>, vector<1x16x16xf32>
    %129 = vector.shape_cast %128 : vector<1x16x16xf32> to vector<16x16xf32>
    %130 = arith.addf %127, %129 : vector<16x16xf32>
    %c2_118 = arith.constant 2 : index
    %c0_119 = arith.constant 0 : index
    %c0_120 = arith.constant 0 : index
    %131 = vector.load %arg3[%c2_118, %c0_119, %c0_120] : memref<3x18x18xf32, #tpu.memory_space<vmem>>, vector<1x16x16xf32>
    %132 = vector.shape_cast %131 : vector<1x16x16xf32> to vector<16x16xf32>
    %cst_121 = arith.constant 0.000000e+00 : f32
    %133 = vector.broadcast %cst_121 : f32 to vector<16x16xf32>
    %134 = arith.subf %133, %132 : vector<16x16xf32>
    %c2_122 = arith.constant 2 : index
    %c0_123 = arith.constant 0 : index
    %c1_124 = arith.constant 1 : index
    %135 = vector.load %arg3[%c2_122, %c0_123, %c1_124] : memref<3x18x18xf32, #tpu.memory_space<vmem>>, vector<1x16x16xf32>
    %136 = vector.shape_cast %135 : vector<1x16x16xf32> to vector<16x16xf32>
    %cst_125 = arith.constant 0.000000e+00 : f32
    %137 = vector.broadcast %cst_125 : f32 to vector<16x16xf32>
    %138 = arith.subf %137, %136 : vector<16x16xf32>
    %139 = arith.addf %134, %138 : vector<16x16xf32>
    %c2_126 = arith.constant 2 : index
    %c0_127 = arith.constant 0 : index
    %c2_128 = arith.constant 2 : index
    %140 = vector.load %arg3[%c2_126, %c0_127, %c2_128] : memref<3x18x18xf32, #tpu.memory_space<vmem>>, vector<1x16x16xf32>
    %141 = vector.shape_cast %140 : vector<1x16x16xf32> to vector<16x16xf32>
    %cst_129 = arith.constant 0.000000e+00 : f32
    %142 = vector.broadcast %cst_129 : f32 to vector<16x16xf32>
    %143 = arith.subf %142, %141 : vector<16x16xf32>
    %144 = arith.addf %139, %143 : vector<16x16xf32>
    %c2_130 = arith.constant 2 : index
    %c2_131 = arith.constant 2 : index
    %c0_132 = arith.constant 0 : index
    %145 = vector.load %arg3[%c2_130, %c2_131, %c0_132] : memref<3x18x18xf32, #tpu.memory_space<vmem>>, vector<1x16x16xf32>
    %146 = vector.shape_cast %145 : vector<1x16x16xf32> to vector<16x16xf32>
    %147 = arith.addf %144, %146 : vector<16x16xf32>
    %c2_133 = arith.constant 2 : index
    %c2_134 = arith.constant 2 : index
    %c1_135 = arith.constant 1 : index
    %148 = vector.load %arg3[%c2_133, %c2_134, %c1_135] : memref<3x18x18xf32, #tpu.memory_space<vmem>>, vector<1x16x16xf32>
    %149 = vector.shape_cast %148 : vector<1x16x16xf32> to vector<16x16xf32>
    %150 = arith.addf %147, %149 : vector<16x16xf32>
    %c2_136 = arith.constant 2 : index
    %c2_137 = arith.constant 2 : index
    %c2_138 = arith.constant 2 : index
    %151 = vector.load %arg3[%c2_136, %c2_137, %c2_138] : memref<3x18x18xf32, #tpu.memory_space<vmem>>, vector<1x16x16xf32>
    %152 = vector.shape_cast %151 : vector<1x16x16xf32> to vector<16x16xf32>
    %153 = arith.addf %150, %152 : vector<16x16xf32>
    %154 = arith.addf %130, %153 : vector<16x16xf32>
    %155 = arith.addf %102, %130 : vector<16x16xf32>
    %156 = arith.addf %103, %153 : vector<16x16xf32>
    %157 = arith.addf %104, %154 : vector<16x16xf32>
    %c0_139 = arith.constant 0 : index
    %c5 = arith.constant 5 : index
    %c0_140 = arith.constant 0 : index
    %c0_141 = arith.constant 0 : index
    %158 = vector.load %arg2[%c0_139, %c5, %c0_140, %c0_141] : memref<1x6x16x16xf32, #tpu.memory_space<vmem>>, vector<1x1x16x16xf32>
    %159 = vector.shape_cast %158 : vector<1x1x16x16xf32> to vector<16x16xf32>
    %160 = vector.shape_cast %154 : vector<16x16xf32> to vector<1x1x16x16xf32>
    tpu.vector_store %arg2[%c0_139, %c5, %c0_140, %c0_141], %160 {strides = array<i32>} : memref<1x6x16x16xf32, #tpu.memory_space<vmem>>, vector<1x1x16x16xf32>,
    %c0_142 = arith.constant 0 : index
    %c0_143 = arith.constant 0 : index
    %c0_144 = arith.constant 0 : index
    %c0_145 = arith.constant 0 : index
    %161 = vector.load %arg2[%c0_142, %c0_143, %c0_144, %c0_145] : memref<1x6x16x16xf32, #tpu.memory_space<vmem>>, vector<1x1x16x16xf32>
    %162 = vector.shape_cast %161 : vector<1x1x16x16xf32> to vector<16x16xf32>
    %163 = vector.shape_cast %155 : vector<16x16xf32> to vector<1x1x16x16xf32>
    tpu.vector_store %arg2[%c0_142, %c0_143, %c0_144, %c0_145], %163 {strides = array<i32>} : memref<1x6x16x16xf32, #tpu.memory_space<vmem>>, vector<1x1x16x16xf32>,
    %c0_146 = arith.constant 0 : index
    %c1_147 = arith.constant 1 : index
    %c0_148 = arith.constant 0 : index
    %c0_149 = arith.constant 0 : index
    %164 = vector.load %arg2[%c0_146, %c1_147, %c0_148, %c0_149] : memref<1x6x16x16xf32, #tpu.memory_space<vmem>>, vector<1x1x16x16xf32>
    %165 = vector.shape_cast %164 : vector<1x1x16x16xf32> to vector<16x16xf32>
    %166 = vector.shape_cast %156 : vector<16x16xf32> to vector<1x1x16x16xf32>
    tpu.vector_store %arg2[%c0_146, %c1_147, %c0_148, %c0_149], %166 {strides = array<i32>} : memref<1x6x16x16xf32, #tpu.memory_space<vmem>>, vector<1x1x16x16xf32>,
    %c0_150 = arith.constant 0 : index
    %c2_151 = arith.constant 2 : index
    %c0_152 = arith.constant 0 : index
    %c0_153 = arith.constant 0 : index
    %167 = vector.load %arg2[%c0_150, %c2_151, %c0_152, %c0_153] : memref<1x6x16x16xf32, #tpu.memory_space<vmem>>, vector<1x1x16x16xf32>
    %168 = vector.shape_cast %167 : vector<1x1x16x16xf32> to vector<16x16xf32>
    %169 = vector.shape_cast %157 : vector<16x16xf32> to vector<1x1x16x16xf32>
    tpu.vector_store %arg2[%c0_150, %c2_151, %c0_152, %c0_153], %169 {strides = array<i32>} : memref<1x6x16x16xf32, #tpu.memory_space<vmem>>, vector<1x1x16x16xf32>,
    return
  }
  func.func @transform_0(%arg0: i32) -> (i32, i32, i32, i32) {
    %c0_i32 = arith.constant 0 : i32
    %c0_i32_0 = arith.constant 0 : i32
    %c0_i32_1 = arith.constant 0 : i32
    %c0_i32_2 = arith.constant 0 : i32
    return %arg0, %c0_i32, %c0_i32_0, %c0_i32_1 : i32, i32, i32, i32
  }
  func.func @transform_1(%arg0: i32) -> (i32, i32, i32, i32) {
    %c0_i32 = arith.constant 0 : i32
    %c0_i32_0 = arith.constant 0 : i32
    %c0_i32_1 = arith.constant 0 : i32
    %c0_i32_2 = arith.constant 0 : i32
    return %arg0, %c0_i32, %c0_i32_0, %c0_i32_1 : i32, i32, i32, i32
  }
}

</mosaic_0001>

<bundles_post_ra>
// kernel: tpu_custom_call.1
= control target key start
LH: loop header
LB: loop body
LE: loop exit
PB: predicated region body
PF: predicated region fallthrough
CT: control target
= control target key end

     0   :  { %6 = vsyncpa [#allocation4], 0  ;;  %s1056_s0 = inlined_call_operand.hbm [shape: f32[2,3,16,16], index: 0, kind: input, shape index: {}]   ;;  %s1057_s1 = inlined_call_operand.hbm [shape: f32[2,6,16,16], index: 1, kind: output, shape index: {}]  }
   0x1   :  { %8 = vsyncpa [#allocation4 + $0x1], 0 }
   0x2   :  { %9 = vsyncpa [#allocation5], 0 }
   0x3   :  { %11 = vsyncpa [#allocation5 + $0x1], 0  ;;  %s727_s6 = smov 0   ;;  %s729_s7 = smov 0  }
   0x4   :  { %s731_s8 = smov 0   ;;  %s733_s9 = smov 0  }
   0x5 LB: > { %s748_s10 = sadd.s32 4294967295, %s705_s9   ;;  %s536_s11 = sadd.s32 4294967294, %s705_s9   ;;  %s705_s9 = sphi %s733_s9, %s1071_s9   ;;  %s701_s8 = sphi %s731_s8, %s1070_s8   ;;  %s697_s7 = sphi %s729_s7, %s1069_s7   ;;  %s693_s6 = sphi %s727_s6, %s1068_s6  }
   0x6   : > { %s752_s12 = sadd.s32 1, %s705_s9   ;;  %s24_s13 = sadd.s32 1, %s701_s8 }
   0x7   : > { %s21_s14 = ssub.s32 %s705_s9, %s752_s12  ;;  %p31_p0 = scmp.ne.s32.totalorder %s701_s8, %s697_s7 }
   0x8   : > { %p22_p1 = scmp.eq.s32.totalorder %s21_s14, 0  ;;  %p32_p2 = scmp.eq.s32.totalorder %s705_s9, 0 }
   0x9   : > { %p37_p3 = scmp.ne.s32.totalorder %s697_s7, %s693_s6  ;;  %p38_p4 = scmp.eq.s32.totalorder %s748_s10, 0 }
   0xa   : > { %s764_s15 = scalar_select %p22_p1, %s701_s8, %s24_s13  }
   0xb   : > { %p33_p5 = por %p32_p2, %p31_p0  ;;  %p766_p6 = por %p38_p4, %p37_p3 }
   0xc   : > { %p61_p7 = scmp.eq.s32.totalorder %s748_s10, 1  ;;  %p67_p8 = scmp.eq.s32.totalorder %s536_s11, 1 }
   0xd   : > { %s1060_s16 = scalar_select %p766_p6, 1, 0 }
   0xe   : > { %p571_p10 = scmp.lt.s32.totalorder %s705_s9, 2  ;;  %p773_p11 = por %p61_p7, %p31_p0 }
   0xf   : > { %p777_p12 = por %p67_p8, %p37_p3  ;;  %s87_s19 = sand.u32 1, %s701_s8  }
  0x10   : > { %s1061_s17 = scalar_select %p773_p11, 1, 0 }
  0x11   : > { %s1062_s18 = scalar_select %p777_p12, 1, 0 }
  0x12   : > { %s555_s20 = smul.u32 768, %s705_s9  ;;  %p788_p13 = pnand %p571_p10, %p33_p5 }
  0x13   : > { %s554_s21 = smul.u32 48, %s87_s19  ;;  %s794_s28 = scalar_lea.sflag [#allocation4], %s87_s19 }
  0x14   : > { %s786_s24 = scalar_lea.hbm %s1056_s0, %s555_s20  ;;  %p615_p1 = pneg %p788_p13 }
  0x15   : > { %s91_s26 = scalar_lea.vmem [#allocation3], %s554_s21  ;;  %s613_s29 = scalar_lea.hbm %s786_s24, 768 }
  0x16   : > { %s98_s27 = sshll.u32 %s91_s26, 4  ;;  %p614_p0 = scmp.ne.s32.totalorder %s786_s24, %s613_s29  ;;  %s792_s27 = int_to_ptr.vmem [resolvable:$true] %s98_s27 }
  0x17   : > { %s618_s3 = scalar_lea.hbm %s1056_s0, 1536  ;;  %p619_p4 = scmp.lt.s32.totalorder %s786_s24, %s1056_s0 }
  0x18   : > { %p616_p2 = pnand %p615_p1, %p614_p0  ;;  %p620_p5 = scmp.lt.s32.totalorder %s618_s3, %s613_s29 }
  0x1a   : > { %p617_p3 = pneg %p616_p2  ;;  %p621_p7 = por %p620_p5, %p619_p4 }
  0x1c   : > { %p622_p8 = pnand %p621_p7, %p617_p3 }
  0x1e   : > { %625 = shalt.err (!%p622_p8)
}
  0x1f   : > { %s626_s11 = scalar_lea.vmem %s792_s27, 768  ;;  %s707_s13 = smov [#allocation3]  }
  0x20   : > { %p627_p10 = scmp.ne.s32.totalorder %s792_s27, %s626_s11  ;;  %s631_s14 = sshll.u32 %s707_s13, 4  ;;  %s632_s14 = int_to_ptr.vmem [resolvable:$false] %s631_s14 }
  0x21   : > { %s633_s19 = scalar_lea.vmem %s632_s14, 1536  ;;  %p634_p2 = scmp.lt.s32.totalorder %s792_s27, %s632_s14 }
  0x22   : > { %p629_p9 = pnand %p627_p10, %p615_p1  ;;  %p635_p12 = scmp.lt.s32.totalorder %s633_s19, %s626_s11 }
  0x24   : > { %p630_p0 = pneg %p629_p9  ;;  %p636_p11 = por %p635_p12, %p634_p2 }
  0x26   : > { %p637_p6 = pnand %p636_p11, %p630_p0 }
  0x28   : > { %640 = shalt.err (!%p637_p6)
}
  0x29   : > { %s708_s20 = smov 128   ;;  %s709_s21 = smov 8  }
  0x2a   : > { %566 = dma.hbm_to_vmem [thread:$0]  (!%p788_p13), %s786_s24, 768, %s792_s27, %s794_s28, %s708_s20, %s708_s20, %s709_s21  }
  0x2b   : > { %p540_p9 = scmp.ge.s32.totalorder %s705_s9, 1  ;;  %p106_p1 = scmp.lt.s32.totalorder %s705_s9, 3 }
  0x2d   : > { %p107_p3 = pnand %p540_p9, %p106_p1 }
  0x2e   : > { %s818_s22 = sand.u32 (!%p107_p3), 1, %s697_s7   ;;  %p1064_p6 = scmp.ne.s32.totalorder (!%p107_p3), %s1060_s16, 0 }
  0x2f   : > { %110 = sbr.rel (%p107_p3) target bundleno = 385 (0x181), region = 24  ;;  %s113_s26 = scalar_lea.sflag (!%p107_p3), [#allocation4], %s818_s22 }
  0x30   : > { %s556_s23 = smul.u32 (!%p107_p3), 48, %s818_s22 }
  0x32   : > { %s116_s29 = scalar_lea.vmem (!%p107_p3), [#allocation3], %s556_s23 }
  0x34   : > { %684 = dma.done.wait (%p1064_p6), %s113_s26, 768  }
  0x35   : > { %686 = vsyncadd (%p1064_p6), %s113_s26, 4294966528  ;;  %vm135_vm0 = vcmask 146432   ;;  %vm138_vm1 = vcmask 140288   ;;  %v710_v0 = vmov 0.0   ;;  %v148_v1 = vld [vmem:[%s116_s29 + $0x10] sm:$0xff]  ;;  %v146_v2 = vld [vmem:[%s116_s29] sm:$0xff] }
  0x36   : > { %140 = vst.msk [vmem:[#allocation2 + $0x18] sm:$0xff] %vm135_vm0, %v710_v0  ;;  %141 = vst.msk [vmem:[#allocation2 + $0x20] sm:$0xff] %vm135_vm0, %v710_v0  ;;  %s711_s24 = smov 1   ;;  %v149_v3 = vld [vmem:[%s116_s29 + $0x18] sm:$0xff]  ;;  %v147_v4 = vld [vmem:[%s116_s29 + $0x8] sm:$0xff]  ;;  %vm176_vm2 = vcmask 138248  }
  0x37   : > { %136 = vst.msk [vmem:[#allocation2] sm:$0xff] %vm135_vm0, %v710_v0  ;;  %137 = vst.msk [vmem:[#allocation2 + $0x8] sm:$0xff] %vm135_vm0, %v710_v0  ;;  %162 = vrot.lane.b32.xlu1 %v148_v1, %s711_s24  ;;  %158 = vrot.lane.b32.xlu0 %v146_v2, %s711_s24  ;;  %v150_v5 = vld [vmem:[%s116_s29 + $0x20] sm:$0xff]  ;;  %v151_v6 = vld [vmem:[%s116_s29 + $0x28] sm:$0xff]  ;;  %s712_s16 = smov 126   ;;  %s713_s25 = smov 127  }
  0x38   : > { %143 = vst.msk [vmem:[#allocation2 + $0x30] sm:$0xff] %vm135_vm0, %v710_v0  ;;  %144 = vst.msk [vmem:[#allocation2 + $0x38] sm:$0xff] %vm135_vm0, %v710_v0  ;;  %s557_s27 = smul.u32 96, %s818_s22  ;;  %vm262_vm3 = vcmask 130048   ;;  %s450_s5 = scalar_lea.sflag [#allocation5], %s818_s22 }
  0x39   : > { %142 = vst.msk [vmem:[#allocation2 + $0x28] sm:$0x3] %vm138_vm1, %v710_v0  ;;  %139 = vst.msk [vmem:[#allocation2 + $0x10] sm:$0x3] %vm138_vm1, %v710_v0  ;;  %s558_s30 = smul.u32 1536, %s748_s10  ;;  %p1065_p12 = scmp.ne.s32.totalorder %s1061_s17, 0 }
  0x3a   : > { %145 = vst.msk [vmem:[#allocation2 + $0x40] sm:$0x3] %vm138_vm1, %v710_v0  ;;  %s969_s28 = scalar_lea.vmem [#allocation6], %s557_s27  ;;  %s714_s13 = smov [#allocation6]  }
  0x3b   : > { %164 = vrot.lane.b32.xlu1 %v149_v3, %s711_s24  ;;  %160 = vrot.lane.b32.xlu0 %v147_v4, %s711_s24  ;;  %s463_s2 = sshll.u32 %s969_s28, 4  ;;  %s1003_s4 = scalar_lea.hbm %s1057_s1, %s558_s30  ;;  %s1011_s2 = int_to_ptr.vmem [resolvable:$true] %s463_s2 }
  0x3c   : > { %s641_s11 = scalar_lea.vmem %s1011_s2, 1536  ;;  %s645_s14 = sshll.u32 %s714_s13, 4  ;;  %s646_s14 = int_to_ptr.vmem [resolvable:$false] %s645_s14 }
  0x3d   : > { %p642_p11 = scmp.ne.s32.totalorder %s1011_s2, %s641_s11  ;;  %s647_s19 = scalar_lea.vmem %s646_s14, 3072 }
  0x3e   : > { %p648_p5 = scmp.lt.s32.totalorder %s1011_s2, %s646_s14  ;;  %p649_p7 = scmp.lt.s32.totalorder %s647_s19, %s641_s11 }
  0x3f   : > { %166 = vrot.lane.b32.xlu0 %v150_v5, %s711_s24  ;;  %168 = vrot.lane.b32.xlu1 %v151_v6, %s711_s24  ;;  %p643_p13 = pnand %p642_p11, %p1065_p12 }
  0x40   : > { %p650_p8 = por %p649_p7, %p648_p5 }
  0x41   : > { %p644_p4 = pneg %p643_p13 }
  0x43   : > { %p651_p10 = pnand %p650_p8, %p644_p4 }
  0xa9   : > { %v163_v7 = vpop.permute.xlu1 %162  ;;  %v159_v8 = vpop.permute.xlu0 %158 }
  0xaa   : > { %179 = vst.msk [vmem:[#allocation2 + $0x19] sm:$0xff] %vm176_vm2, %v163_v7  ;;  %177 = vst.msk [vmem:[#allocation2 + $0x1] sm:$0xff] %vm176_vm2, %v159_v8 }
  0xad   : > { %v165_v9 = vpop.permute.xlu1 %164  ;;  %v161_v10 = vpop.permute.xlu0 %160 }
  0xae   : > { %180 = vst.msk [vmem:[#allocation2 + $0x21] sm:$0xff] %vm176_vm2, %v165_v9  ;;  %178 = vst.msk [vmem:[#allocation2 + $0x9] sm:$0xff] %vm176_vm2, %v161_v10 }
  0xb1   : > { %v167_v11 = vpop.permute.xlu0 %166  ;;  %v183_v12 = vld [vmem:[#allocation2] sm:$0xff]  ;;  %v169_v13 = vpop.permute.xlu1 %168  ;;  %v266_v14 = vld [vmem:[#allocation2 + $0x18] sm:$0xff] }
  0xb2   : > { %181 = vst.msk [vmem:[#allocation2 + $0x31] sm:$0xff] %vm176_vm2, %v167_v11  ;;  %189 = vrot.lane.b32.xlu0 %v183_v12, %s712_s16  ;;  %182 = vst.msk [vmem:[#allocation2 + $0x39] sm:$0xff] %vm176_vm2, %v169_v13  ;;  %v831_v19 = vld [vmem:[#allocation2 + $0x1] sm:$0xff]  ;;  %v838_v21 = vld [vmem:[#allocation2 + $0x19] sm:$0xff]  ;;  %v878_v29 = vsub.f32 0.0, %v183_v12  ;;  %v886_v31 = vsub.f32 0.0, %v266_v14 }
  0xb3   : > { %v199_v52 = vsub.f32 0.0, %v831_v19  ;;  %v282_v53 = vsub.f32 0.0, %v838_v21 }
  0xb5   : > { %v184_v15 = vld [vmem:[#allocation2 + $0x8] sm:$0xff]  ;;  %v267_v16 = vld [vmem:[#allocation2 + $0x20] sm:$0xff] }
  0xb6   : > { %191 = vrot.lane.b32.xlu1 %v184_v15, %s712_s16  ;;  %272 = vrot.lane.b32.xlu0 %v266_v14, %s712_s16  ;;  %v836_v20 = vld [vmem:[#allocation2 + $0x9] sm:$0xff]  ;;  %v844_v22 = vld [vmem:[#allocation2 + $0x21] sm:$0xff]  ;;  %v884_v30 = vsub.f32 0.0, %v184_v15  ;;  %v892_v32 = vsub.f32 0.0, %v267_v16 }
  0xb7   : > { %v846_v23 = vld [vmem:[#allocation2 + $0x2] sm:$0xff]  ;;  %v852_v24 = vld [vmem:[#allocation2 + $0xa] sm:$0xff]  ;;  %v854_v25 = vld [vmem:[#allocation2 + $0x1a] sm:$0xff]  ;;  %v200_v60 = vsub.f32 0.0, %v836_v20  ;;  %v283_v61 = vsub.f32 0.0, %v844_v22 }
  0xb8   : > { %v860_v26 = vld [vmem:[#allocation2 + $0x22] sm:$0xff]  ;;  %v215_v2 = vsub.f32 0.0, %v846_v23  ;;  %v298_v4 = vsub.f32 0.0, %v854_v25  ;;  %v216_v12 = vsub.f32 0.0, %v852_v24 }
  0xb9   : > { %v354_v17 = vld [vmem:[#allocation2 + $0x30] sm:$0xff]  ;;  %v355_v18 = vld [vmem:[#allocation2 + $0x38] sm:$0xff]  ;;  %v299_v13 = vsub.f32 0.0, %v860_v26 }
  0xba   : > { %274 = vrot.lane.b32.xlu1 %v267_v16, %s712_s16  ;;  %360 = vrot.lane.b32.xlu0 %v354_v17, %s712_s16  ;;  %v862_v27 = vld [vmem:[#allocation2 + $0x31] sm:$0xff]  ;;  %v868_v28 = vld [vmem:[#allocation2 + $0x39] sm:$0xff]  ;;  %v902_v33 = vsub.f32 0.0, %v354_v17  ;;  %v908_v34 = vsub.f32 0.0, %v355_v18 }
  0xbb   : > { %v914_v35 = vld [vmem:[#allocation2 + $0x32] sm:$0xff]  ;;  %v920_v36 = vld [vmem:[#allocation2 + $0x3a] sm:$0xff] }
  0xbe   : > { %362 = vrot.lane.b32.xlu1 %v355_v18, %s712_s16  ;;  %205 = vrot.lane.b32.xlu0 %v831_v19, %s712_s16 }
  0xc2   : > { %207 = vrot.lane.b32.xlu1 %v836_v20, %s712_s16  ;;  %288 = vrot.lane.b32.xlu0 %v838_v21, %s712_s16 }
  0xc6   : > { %290 = vrot.lane.b32.xlu1 %v844_v22, %s712_s16  ;;  %249 = vrot.lane.b32.xlu0 %v846_v23, %s713_s25 }
  0xca   : > { %251 = vrot.lane.b32.xlu1 %v852_v24, %s713_s25  ;;  %332 = vrot.lane.b32.xlu0 %v854_v25, %s713_s25 }
  0xce   : > { %334 = vrot.lane.b32.xlu1 %v860_v26, %s713_s25  ;;  %376 = vrot.lane.b32.xlu0 %v862_v27, %s712_s16 }
  0xd2   : > { %378 = vrot.lane.b32.xlu1 %v868_v28, %s712_s16  ;;  %221 = vrot.lane.b32.xlu0 %v846_v23, %s712_s16 }
  0xd6   : > { %223 = vrot.lane.b32.xlu1 %v852_v24, %s712_s16  ;;  %304 = vrot.lane.b32.xlu0 %v854_v25, %s712_s16 }
  0xda   : > { %306 = vrot.lane.b32.xlu1 %v860_v26, %s712_s16  ;;  %231 = vrot.lane.b32.xlu0 %v878_v29, %s713_s25 }
  0xde   : > { %233 = vrot.lane.b32.xlu1 %v884_v30, %s713_s25  ;;  %314 = vrot.lane.b32.xlu0 %v886_v31, %s713_s25 }
  0xe2   : > { %316 = vrot.lane.b32.xlu1 %v892_v32, %s713_s25  ;;  %239 = vrot.lane.b32.xlu0 %v878_v29, %s712_s16 }
  0xe6   : > { %241 = vrot.lane.b32.xlu1 %v884_v30, %s712_s16  ;;  %322 = vrot.lane.b32.xlu0 %v886_v31, %s712_s16 }
  0xea   : > { %324 = vrot.lane.b32.xlu1 %v892_v32, %s712_s16  ;;  %402 = vrot.lane.b32.xlu0 %v902_v33, %s713_s25 }
  0xee   : > { %404 = vrot.lane.b32.xlu1 %v908_v34, %s713_s25  ;;  %410 = vrot.lane.b32.xlu0 %v902_v33, %s712_s16 }
  0xf2   : > { %412 = vrot.lane.b32.xlu1 %v908_v34, %s712_s16  ;;  %420 = vrot.lane.b32.xlu0 %v914_v35, %s713_s25 }
  0xf6   : > { %422 = vrot.lane.b32.xlu1 %v920_v36, %s713_s25  ;;  %392 = vrot.lane.b32.xlu0 %v914_v35, %s712_s16 }
  0xfa   : > { %394 = vrot.lane.b32.xlu1 %v920_v36, %s712_s16 }
 0x124   : > { %v190_v37 = vpop.permute.xlu0 %189 }
 0x125   : > { %v195_v50 = vadd.f32 %v190_v37, %v878_v29 }
 0x127   : > { %v201_v58 = vadd.f32 %v199_v52, %v195_v50 }
 0x128   : > { %v192_v38 = vpop.permute.xlu1 %191  ;;  %v273_v39 = vpop.permute.xlu0 %272 }
 0x129   : > { %v278_v51 = vadd.f32 %v273_v39, %v886_v31  ;;  %v196_v56 = vadd.f32 %v192_v38, %v884_v30 }
 0x12b   : > { %v284_v59 = vadd.f32 %v282_v53, %v278_v51  ;;  %v202_v3 = vadd.f32 %v200_v60, %v196_v56 }
 0x12c   : > { %v275_v40 = vpop.permute.xlu1 %274  ;;  %v928_v41 = vpop.permute.xlu0 %360 }
 0x12d   : > { %v279_v57 = vadd.f32 %v275_v40, %v892_v32 }
 0x12f   : > { %v285_v5 = vadd.f32 %v283_v61, %v279_v57 }
 0x130   : > { %v930_v42 = vpop.permute.xlu1 %362  ;;  %v206_v43 = vpop.permute.xlu0 %205 }
 0x131   : > { %v211_v62 = vadd.f32 %v206_v43, %v201_v58 }
 0x133   : > { %v217_v6 = vadd.f32 %v215_v2, %v211_v62 }
 0x134   : > { %v208_v44 = vpop.permute.xlu1 %207  ;;  %v289_v45 = vpop.permute.xlu0 %288 }
 0x135   : > { %v294_v63 = vadd.f32 %v289_v45, %v284_v59  ;;  %v212_v7 = vadd.f32 %v208_v44, %v202_v3 }
 0x137   : > { %v300_v8 = vadd.f32 %v298_v4, %v294_v63  ;;  %v218_v16 = vadd.f32 %v216_v12, %v212_v7 }
 0x138   : > { %v291_v46 = vpop.permute.xlu1 %290  ;;  %v250_v47 = vpop.permute.xlu0 %249 }
 0x139   : > { %v295_v9 = vadd.f32 %v291_v46, %v285_v5 }
 0x13b   : > { %v301_v17 = vadd.f32 %v299_v13, %v295_v9 }
 0x13c   : > { %v252_v48 = vpop.permute.xlu1 %251  ;;  %v333_v49 = vpop.permute.xlu0 %332 }
 0x140   : > { %v936_v54 = vpop.permute.xlu1 %334  ;;  %v938_v55 = vpop.permute.xlu0 %376 }
 0x144   : > { %v944_v0 = vpop.permute.xlu1 %378  ;;  %v222_v1 = vpop.permute.xlu0 %221 }
 0x145   : > { %v227_v14 = vadd.f32 %v222_v1, %v217_v6 }
 0x148   : > { %v224_v10 = vpop.permute.xlu1 %223  ;;  %v305_v11 = vpop.permute.xlu0 %304 }
 0x149   : > { %v310_v15 = vadd.f32 %v305_v11, %v300_v8  ;;  %v228_v21 = vadd.f32 %v224_v10, %v218_v16 }
 0x14b   : > { %v950_v18 = vadd.f32 %v310_v15, %v227_v14 }
 0x14c   : > { %v307_v19 = vpop.permute.xlu1 %306  ;;  %v232_v20 = vpop.permute.xlu0 %231 }
 0x14d   : > { %v311_v22 = vadd.f32 %v307_v19, %v301_v17  ;;  %v237_v40 = vadd.f32 %v232_v20, %v878_v29 }
 0x14f   : > { %v952_v37 = vadd.f32 %v311_v22, %v228_v21 }
 0x150   : > { %v234_v38 = vpop.permute.xlu1 %233  ;;  %v315_v39 = vpop.permute.xlu0 %314 }
 0x151   : > { %v238_v46 = vadd.f32 %v234_v38, %v884_v30  ;;  %v320_v50 = vadd.f32 %v315_v39, %v886_v31  ;;  %v366_v30 = vadd.f32 %v928_v41, %v902_v33 }
 0x154   : > { %v317_v43 = vpop.permute.xlu1 %316  ;;  %v240_v44 = vpop.permute.xlu0 %239 }
 0x155   : > { %v245_v45 = vadd.f32 %v240_v44, %v237_v40  ;;  %v321_v59 = vadd.f32 %v317_v43, %v892_v32 }
 0x157   : > { %v247_v51 = vadd.f32 %v245_v45, %v846_v23 }
 0x158   : > { %v242_v52 = vpop.permute.xlu1 %241  ;;  %v323_v53 = vpop.permute.xlu0 %322 }
 0x159   : > { %v255_v56 = vadd.f32 %v250_v47, %v247_v51  ;;  %v246_v57 = vadd.f32 %v242_v52, %v238_v46  ;;  %v328_v58 = vadd.f32 %v323_v53, %v320_v50  ;;  %v370_v47 = vsub.f32 0.0, %v862_v27 }
 0x15b   : > { %v248_v60 = vadd.f32 %v246_v57, %v852_v24  ;;  %v330_v29 = vadd.f32 %v328_v58, %v854_v25  ;;  %v257_v61 = vadd.f32 %v255_v56, %v222_v1  ;;  %v367_v25 = vadd.f32 %v930_v42, %v908_v34 }
 0x15c   : > { %v325_v62 = vpop.permute.xlu1 %324  ;;  %v403_v31 = vpop.permute.xlu0 %402  ;;  %v372_v1 = vadd.f32 %v370_v47, %v366_v30 }
 0x15d   : > { %v256_v63 = vadd.f32 %v252_v48, %v248_v60  ;;  %v338_v23 = vadd.f32 %v333_v49, %v330_v29  ;;  %v329_v2 = vadd.f32 %v325_v62, %v321_v59  ;;  %v259_v3 = vadd.f32 %v257_v61, %v227_v14 }
 0x15e   : > { %v408_v32 = vadd.f32 %v403_v31, %v902_v33  ;;  %v371_v33 = vsub.f32 0.0, %v868_v28  ;;  %v382_v49 = vadd.f32 %v938_v55, %v372_v1  ;;  %v386_v28 = vsub.f32 0.0, %v914_v35 }
 0x15f   : > { %v331_v4 = vadd.f32 %v329_v2, %v860_v26  ;;  %v340_v24 = vadd.f32 %v338_v23, %v305_v11  ;;  %v258_v5 = vadd.f32 %v256_v63, %v224_v10  ;;  %541 = vst.msk [vmem:[%s969_s28 + $0x30] sm:$0xff] %vm262_vm3, %v259_v3 }
 0x160   : > { %v405_v41 = vpop.permute.xlu1 %404  ;;  %v411_v6 = vpop.permute.xlu0 %410  ;;  %v373_v11 = vadd.f32 %v371_v33, %v367_v25  ;;  %v388_v16 = vadd.f32 %v386_v28, %v382_v49 }
 0x161   : > { %v339_v27 = vadd.f32 %v936_v54, %v331_v4  ;;  %v416_v26 = vadd.f32 %v411_v6, %v408_v32  ;;  %v342_v48 = vadd.f32 %v340_v24, %v310_v15  ;;  %v260_v7 = vadd.f32 %v258_v5, %v228_v21 }
 0x162   : > { %v409_v42 = vadd.f32 %v405_v41, %v908_v34  ;;  %v383_v55 = vadd.f32 %v944_v0, %v373_v11  ;;  %v387_v21 = vsub.f32 0.0, %v920_v36  ;;  %v346_v38 = vadd.f32 %v340_v24, %v257_v61 }
 0x163   : > { %v418_v8 = vadd.f32 %v416_v26, %v914_v35  ;;  %543 = vst.msk [vmem:[%s969_s28 + $0x40] sm:$0xff] %vm262_vm3, %v342_v48  ;;  %v348_v9 = vadd.f32 %v342_v48, %v259_v3  ;;  %v341_v10 = vadd.f32 %v339_v27, %v307_v19  ;;  %542 = vst.msk [vmem:[%s969_s28 + $0x38] sm:$0xff] %vm262_vm3, %v260_v7 }
 0x164   : > { %v413_v12 = vpop.permute.xlu1 %412  ;;  %v421_v13 = vpop.permute.xlu0 %420  ;;  %v389_v0 = vadd.f32 %v387_v21, %v383_v55 }
 0x165   : > { %v417_v54 = vadd.f32 %v413_v12, %v409_v42  ;;  %v343_v14 = vadd.f32 %v341_v10, %v311_v22  ;;  %v426_v15 = vadd.f32 %v421_v13, %v418_v8 }
 0x167   : > { %v419_v34 = vadd.f32 %v417_v54, %v920_v36  ;;  %544 = vst.msk [vmem:[%s969_s28 + $0x48] sm:$0xff] %vm262_vm3, %v343_v14  ;;  %v349_v17 = vadd.f32 %v343_v14, %v260_v7  ;;  %v347_v36 = vadd.f32 %v341_v10, %v258_v5 }
 0x168   : > { %v423_v19 = vpop.permute.xlu1 %422  ;;  %v393_v20 = vpop.permute.xlu0 %392 }
 0x169   : > { %v398_v35 = vadd.f32 %v393_v20, %v388_v16  ;;  %v428_v22 = vadd.f32 %v426_v15, %v393_v20  ;;  %v427_v39 = vadd.f32 %v423_v19, %v419_v34 }
 0x16b   : > { %v430_v40 = vadd.f32 %v428_v22, %v398_v35  ;;  %v432_v43 = vadd.f32 %v398_v35, %v950_v18  ;;  %v434_v44 = vadd.f32 %v428_v22, %v346_v38 }
 0x16c   : > { %v395_v45 = vpop.permute.xlu1 %394 }
 0x16d   : > { %v436_v46 = vadd.f32 %v430_v40, %v348_v9  ;;  %545 = vst.msk [vmem:[%s969_s28 + $0x50] sm:$0xff] %vm262_vm3, %v430_v40  ;;  %441 = vst.msk [vmem:[%s969_s28] sm:$0xff] %vm262_vm3, %v432_v43  ;;  %v399_v50 = vadd.f32 %v395_v45, %v389_v0  ;;  %v429_v51 = vadd.f32 %v427_v39, %v395_v45 }
 0x16e   : > { %547 = vst.msk [vmem:[%s969_s28 + $0x10] sm:$0xff] %vm262_vm3, %v434_v44 }
 0x16f   : > { %549 = vst.msk [vmem:[%s969_s28 + $0x20] sm:$0xff] %vm262_vm3, %v436_v46  ;;  %v431_v18 = vadd.f32 %v429_v51, %v399_v50  ;;  %v433_v52 = vadd.f32 %v399_v50, %v952_v37  ;;  %v435_v53 = vadd.f32 %v429_v51, %v347_v36 }
 0x171   : > { %v437_v56 = vadd.f32 %v431_v18, %v349_v17  ;;  %546 = vst.msk [vmem:[%s969_s28 + $0x58] sm:$0xff] %vm262_vm3, %v431_v18  ;;  %442 = vst.msk [vmem:[%s969_s28 + $0x8] sm:$0xff] %vm262_vm3, %v433_v52 }
 0x172   : > { %548 = vst.msk [vmem:[%s969_s28 + $0x18] sm:$0xff] %vm262_vm3, %v435_v53 }
 0x173   : > { %550 = vst.msk [vmem:[%s969_s28 + $0x28] sm:$0xff] %vm262_vm3, %v437_v56 }
 0x174   : > { %654 = shalt.err (!%p651_p10)
}
 0x175   : > { %s655_s20 = scalar_lea.hbm %s1003_s4, 1536  ;;  %s659_s26 = scalar_lea.hbm %s1057_s1, 3072 }
 0x176   : > { %p656_p0 = scmp.ne.s32.totalorder %s1003_s4, %s655_s20  ;;  %p660_p1 = scmp.lt.s32.totalorder %s1003_s4, %s1057_s1 }
 0x177   : > { %p661_p3 = scmp.lt.s32.totalorder %s659_s26, %s655_s20 }
 0x178   : > { %p657_p2 = pnand %p656_p0, %p1065_p12 }
 0x179   : > { %p662_p6 = por %p661_p3, %p660_p1 }
 0x17a   : > { %p658_p9 = pneg %p657_p2 }
 0x17c   : > { %p663_p11 = pnand %p662_p6, %p658_p9 }
 0x17e   : > { %666 = shalt.err (!%p663_p11)
}
 0x17f   : > { %s715_s16 = smov 128   ;;  %s716_s25 = smov 8  }
 0x180   : > { %561 = dma.vmem_to_hbm [thread:$0]  (%p1065_p12), %s1011_s2, 1536, %s1003_s4, %s450_s5, %s715_s16, %s715_s16, %s716_s25  }
 0x181 PF: > { %s478_s27 = sand.u32 1, %s693_s6   ;;  %p1066_p13 = scmp.ne.s32.totalorder %s1062_s18, 0 }
 0x182   : > { %p1067_p4 = scmp.ge.s32.totalorder %s705_s9, 2  ;;  %s479_s28 = scalar_lea.sflag [#allocation5], %s478_s27 }
 0x184   : > { %p568_p5 = pnand %p1067_p4, %p1066_p13 }
 0x186   : > { %p569_p7 = pneg %p568_p5 }
 0x188   : > { %688 = dma.done.wait (%p569_p7), %s479_s28, 1536  }
 0x189   : > { %690 = vsyncadd (%p569_p7), %s479_s28, 4294965760  ;;  %p14_p8 = scmp.ge.s32.totalorder %s752_s12, 4   ;;  %s1068_s6 = smov %s697_s7 }
 0x18a   : > { %s1069_s7 = smov %s701_s8  ;;  %s1070_s8 = smov %s764_s15 }
 0x18b   : > { %s1071_s9 = smov %s752_s12  ;;  %16 = sbr.rel (!%p14_p8) target bundleno = 5 (0x5), region = 76 }
 0x190   :  { %484 = vsyncpa [#allocation4], 1 }
 0x191   :  { %486 = vsyncpa [#allocation4 + $0x1], 1 }
 0x192   :  { %487 = vsyncpa [#allocation5], 1 }
 0x193   :  { %489 = vsyncpa [#allocation5 + $0x1], 1 }

</bundles_post_ra>
